<compile_context>
chip_gen: v7x
topology: tpu7x:2x2x1
jax: 0.10.0
libtpu: 0.0.40
codegen_flags: <defaults>
</compile_context>

<pallas_src>
import jax
import jax.numpy as jnp
from jax.experimental import pallas as pl
from jax.experimental.pallas import tpu as pltpu


def toy_mlp_kernel(x_ref, w1_ref, b1_ref, w2_ref, b2_ref, o_ref):
    # h = relu(x @ W1 + b1)      (f32 MXU matmul, f32 epilogue)
    h = jnp.dot(x_ref[...], w1_ref[...], preferred_element_type=jnp.float32)
    h = jnp.maximum(h + b1_ref[...], 0.0)
    # y = h @ W2 + b2
    y = jnp.dot(h, w2_ref[...], preferred_element_type=jnp.float32)
    o_ref[...] = (y + b2_ref[...]).astype(o_ref.dtype)


def toy_model_forward(x, w1, b1, w2, b2, *, tb_max=2048):
    """x: (B, 10) f32; w1: (10, 10); b1: (10,); w2: (10, 5); b2: (5,)."""
    B, in_f = x.shape
    hid_f = w1.shape[1]
    out_f = w2.shape[1]

    # Batch tile: large for real batches (amortizes ~0.35 us/grid-step), else
    # round B up to a multiple of 8 (f32 sublane granularity).
    TB = tb_max if B >= tb_max else max(8, -(-B // 8) * 8)
    grid = (pl.cdiv(B, TB),)

    # Biases as 2-D (1, n) rows for clean in-kernel broadcasting.  (In a real
    # model these would be prepared once at init; they are metadata-cheap.)
    b1r = b1.reshape(1, hid_f).astype(jnp.float32)
    b2r = b2.reshape(1, out_f).astype(jnp.float32)

    out = pl.pallas_call(
        toy_mlp_kernel,
        out_shape=jax.ShapeDtypeStruct((B, out_f), jnp.float32),
        grid=grid,
        in_specs=[
            pl.BlockSpec((TB, in_f), lambda i: (i, 0)),      # x: tiled over batch
            pl.BlockSpec((in_f, hid_f), lambda i: (0, 0)),   # W1: VMEM-resident
            pl.BlockSpec((1, hid_f), lambda i: (0, 0)),      # b1: VMEM-resident
            pl.BlockSpec((hid_f, out_f), lambda i: (0, 0)),  # W2: VMEM-resident
            pl.BlockSpec((1, out_f), lambda i: (0, 0)),      # b2: VMEM-resident
        ],
        out_specs=pl.BlockSpec((TB, out_f), lambda i: (i, 0)),
        compiler_params=pltpu.CompilerParams(
            dimension_semantics=("parallel",)),
    )(x.astype(jnp.float32), w1.astype(jnp.float32), b1r,
      w2.astype(jnp.float32), b2r)

    return out


def init_params(key):
    # Deterministic init mimicking nn.Linear shapes:
    #   net1: Linear(10, 10) -> W1 (10,10), b1 (10,)
    #   net2: Linear(10, 5)  -> W2 (10,5),  b2 (5,)
    k1, k2, k3, k4 = jax.random.split(key, 4)
    bound = 1.0 / jnp.sqrt(10.0)
    w1 = jax.random.uniform(k1, (10, 10), jnp.float32, -bound, bound)
    b1 = jax.random.uniform(k2, (10,), jnp.float32, -bound, bound)
    w2 = jax.random.uniform(k3, (10, 5), jnp.float32, -bound, bound)
    b2 = jax.random.uniform(k4, (5,), jnp.float32, -bound, bound)
    return w1, b1, w2, b2


if __name__ == "__main__":
    key = jax.random.PRNGKey(0)
    kx, kp = jax.random.split(key)

    B = 8
    x = jax.random.normal(kx, (B, 10), jnp.float32)
    w1, b1, w2, b2 = init_params(kp)

    out = toy_model_forward(x, w1, b1, w2, b2)
    out = jax.block_until_ready(out)

    # Pure-JAX f32 reference of the same forward pass.  Kernel matmuls run on
    # the MXU; allow a small tolerance for its internal pass structure.
    ref = jnp.maximum(x @ w1 + b1[None, :], 0.0) @ w2 + b2[None, :]
    assert out.shape == (B, 5)
    assert jnp.allclose(out, ref, atol=2e-2, rtol=2e-2), (
        f"max abs err {jnp.max(jnp.abs(out - ref)):.4e}")

    print("KERNEL_OK")
</pallas_src>

<mosaic_0001>
module attributes {stable_mosaic.version = 11 : i64} {
  func.func @toy_mlp_kernel(%arg0: i32, %arg1: memref<8x10xf32, #tpu.memory_space<vmem>>, %arg2: memref<10x10xf32, #tpu.memory_space<vmem>>, %arg3: memref<1x10xf32, #tpu.memory_space<vmem>>, %arg4: memref<10x5xf32, #tpu.memory_space<vmem>>, %arg5: memref<1x5xf32, #tpu.memory_space<vmem>>, %arg6: memref<8x5xf32, #tpu.memory_space<vmem>>) attributes {dimension_semantics = [#tpu.dimension_semantics<parallel>], iteration_bounds = array<i64: 1>, scalar_prefetch = 0 : i64, scratch_operands = 0 : i64, tpu.core_type = #tpu.core_type<tc>, window_params = [{transform_indices = @transform_0, window_bounds = array<i64: 8, 10>}, {pipeline_mode = #tpu.pipeline_mode<synchronous>, transform_indices = @transform_1, window_bounds = array<i64: 10, 10>}, {pipeline_mode = #tpu.pipeline_mode<synchronous>, transform_indices = @transform_2, window_bounds = array<i64: 1, 10>}, {pipeline_mode = #tpu.pipeline_mode<synchronous>, transform_indices = @transform_3, window_bounds = array<i64: 10, 5>}, {pipeline_mode = #tpu.pipeline_mode<synchronous>, transform_indices = @transform_4, window_bounds = array<i64: 1, 5>}, {transform_indices = @transform_5, window_bounds = array<i64: 8, 5>}]} {
    %c0 = arith.constant 0 : index
    %c0_0 = arith.constant 0 : index
    %0 = vector.load %arg1[%c0, %c0_0] : memref<8x10xf32, #tpu.memory_space<vmem>>, vector<8x10xf32>
    %c0_1 = arith.constant 0 : index
    %c0_2 = arith.constant 0 : index
    %1 = vector.load %arg2[%c0_1, %c0_2] : memref<10x10xf32, #tpu.memory_space<vmem>>, vector<10x10xf32>
    %cst = arith.constant dense<0.000000e+00> : vector<8x10xf32>
    %2 = tpu.matmul %0, %1, %cst {dimension_numbers = #tpu.dot_dimension_numbers<[1], [0], [0], [1], [0, 0, 1, 1], [], []>} : vector<8x10xf32>, vector<10x10xf32>, vector<8x10xf32> -> vector<8x10xf32>
    %c0_3 = arith.constant 0 : index
    %c0_4 = arith.constant 0 : index
    %3 = vector.load %arg3[%c0_3, %c0_4] : memref<1x10xf32, #tpu.memory_space<vmem>>, vector<1x10xf32>
    %4 = vector.broadcast %3 : vector<1x10xf32> to vector<8x10xf32>
    %5 = arith.addf %2, %4 : vector<8x10xf32>
    %cst_5 = arith.constant 0.000000e+00 : f32
    %6 = vector.broadcast %cst_5 : f32 to vector<8x10xf32>
    %7 = arith.maximumf %5, %6 : vector<8x10xf32>
    %c0_6 = arith.constant 0 : index
    %c0_7 = arith.constant 0 : index
    %8 = vector.load %arg4[%c0_6, %c0_7] : memref<10x5xf32, #tpu.memory_space<vmem>>, vector<10x5xf32>
    %cst_8 = arith.constant dense<0.000000e+00> : vector<8x5xf32>
    %9 = tpu.matmul %7, %8, %cst_8 {dimension_numbers = #tpu.dot_dimension_numbers<[1], [0], [0], [1], [0, 0, 1, 1], [], []>} : vector<8x10xf32>, vector<10x5xf32>, vector<8x5xf32> -> vector<8x5xf32>
    %c0_9 = arith.constant 0 : index
    %c0_10 = arith.constant 0 : index
    %10 = vector.load %arg5[%c0_9, %c0_10] : memref<1x5xf32, #tpu.memory_space<vmem>>, vector<1x5xf32>
    %11 = vector.broadcast %10 : vector<1x5xf32> to vector<8x5xf32>
    %12 = arith.addf %9, %11 : vector<8x5xf32>
    %c0_11 = arith.constant 0 : index
    %c0_12 = arith.constant 0 : index
    %13 = vector.load %arg6[%c0_11, %c0_12] : memref<8x5xf32, #tpu.memory_space<vmem>>, vector<8x5xf32>
    tpu.vector_store %arg6[%c0_11, %c0_12], %12 {strides = array<i32>} : memref<8x5xf32, #tpu.memory_space<vmem>>, vector<8x5xf32>,
    return
  }
  func.func @transform_0(%arg0: i32) -> (i32, i32) {
    %c0_i32 = arith.constant 0 : i32
    %c0_i32_0 = arith.constant 0 : i32
    return %arg0, %c0_i32 : i32, i32
  }
  func.func @transform_1(%arg0: i32) -> (i32, i32) {
    %c0_i32 = arith.constant 0 : i32
    %c0_i32_0 = arith.constant 0 : i32
    %c0_i32_1 = arith.constant 0 : i32
    return %c0_i32, %c0_i32_0 : i32, i32
  }
  func.func @transform_2(%arg0: i32) -> (i32, i32) {
    %c0_i32 = arith.constant 0 : i32
    %c0_i32_0 = arith.constant 0 : i32
    %c0_i32_1 = arith.constant 0 : i32
    return %c0_i32, %c0_i32_0 : i32, i32
  }
  func.func @transform_3(%arg0: i32) -> (i32, i32) {
    %c0_i32 = arith.constant 0 : i32
    %c0_i32_0 = arith.constant 0 : i32
    %c0_i32_1 = arith.constant 0 : i32
    return %c0_i32, %c0_i32_0 : i32, i32
  }
  func.func @transform_4(%arg0: i32) -> (i32, i32) {
    %c0_i32 = arith.constant 0 : i32
    %c0_i32_0 = arith.constant 0 : i32
    %c0_i32_1 = arith.constant 0 : i32
    return %c0_i32, %c0_i32_0 : i32, i32
  }
  func.func @transform_5(%arg0: i32) -> (i32, i32) {
    %c0_i32 = arith.constant 0 : i32
    %c0_i32_0 = arith.constant 0 : i32
    return %arg0, %c0_i32 : i32, i32
  }
}

</mosaic_0001>

<bundles_post_ra>
// kernel: tpu_custom_call.1
= control target key start
LH: loop header
LB: loop body
LE: loop exit
PB: predicated region body
PF: predicated region fallthrough
CT: control target
= control target key end

     0   :  { %vm35_vm0 = vcmask 1041408   ;;  %v274_v2 = vmov 0.0|0.0   ;;  %vm275_vm1 = vmmov 1   ;;  %vm276_vm3 = vmmov 0   ;;  %s342_s0 = inlined_call_operand.vmem [shape: f32[8,10], index: 0, kind: input, shape index: {}]   ;;  %s343_s1 = inlined_call_operand.vmem [shape: f32[10,10], index: 1, kind: input, shape index: {}]   ;;  %s344_s2 = inlined_call_operand.vmem [shape: f32[1,10], index: 2, kind: input, shape index: {}]   ;;  %s345_s3 = inlined_call_operand.vmem [shape: f32[10,5], index: 3, kind: input, shape index: {}]   ;;  %s346_s4 = inlined_call_operand.vmem [shape: f32[1,5], index: 4, kind: input, shape index: {}]   ;;  %s347_s5 = inlined_call_operand.hbm [shape: f32[8,5], index: 5, kind: output, shape index: {}]  }
   0x1   :  { %v22_v0 = vld [vmem:[%s343_s1] sm:$0xff]  ;;  %v23_v1 = vld [vmem:[%s343_s1 + $0x8] sm:$0x3]  ;;  %237 = vmatprep.subr.bf16.mxu0 %v274_v2  ;;  %vm239_vm2 = vmpackc.low %vm35_vm0, %vm275_vm1  ;;  %241 = vmatprep.subr.bf16.mxu1 %v274_v2  ;;  %v277_v4 = vmov 0.0  }
   0x2   :  { %v238_v3 = vpack.c.bf16 %v23_v1, %v22_v0  ;;  %227 = vmatprep.mubr.msk.f32.mxu0 %vm276_vm3, %v277_v4  ;;  %234 = vmatprep.mubr.msk.f32.mxu1 %vm276_vm3, %v277_v4 }
   0x3   :  { %10 = vsyncpa [#allocation3], 0  ;;  %v21_v5 = vld [vmem:[%s342_s0] sm:$0xff]  ;;  %vm31_vm4 = vcmask 80896   ;;  %v111_v7 = vld [vmem:[%s345_s3 + $0x8] sm:$0x3] }
   0x4   :  { %240 = vmatpush3.bf16.msk.msra.mxu0 %vm239_vm2, %v238_v3  ;;  %v110_v6 = vld [vmem:[%s345_s3] sm:$0xff]  ;;  %s278_s30 = smov [#allocation2]   ;;  %vm195_vm5 = vcmask 39936  }
   0x5   :  { %v242_v8 = vpack.c.bf16 %v111_v7, %v110_v6  ;;  %v211_v9 = vld [vmem:[%s344_s2] ss:$0 sm:$0xff]  ;;  %s203_s6 = sshll.u32 %s278_s30, 4  ;;  %s204_s6 = int_to_ptr.vmem [resolvable:$true] %s203_s6 }
   0x6   :  { %v214_v14 = vld [vmem:[%s346_s4] ss:$0 sm:$0xff]  ;;  %s250_s3 = scalar_lea.vmem %s204_s6, 128  ;;  %p255_p1 = scmp.lt.s32.totalorder %s204_s6, %s204_s6 }
   0x7   :  { %228 = vmatmul.mubr.msk.f32.vlgmr.msra.gmra.mrb[0].mxu0 %vm31_vm4, %v21_v5  ;;  %244 = vmatpush3.bf16.msk.msra.mxu1 %vm239_vm2, %v242_v8  ;;  %p251_p0 = scmp.ne.s32.totalorder %s204_s6, %s250_s3  ;;  %p256_p2 = scmp.lt.s32.totalorder %s250_s3, %s250_s3 }
   0x9   :  { %p257_p3 = por %p256_p2, %p255_p1 }
   0xb   :  { %p258_p4 = pnand %p257_p3, %p251_p0 }
  0xda   :  { %v105_v10 = vpop.f32.mrb[0].mxu0 }
  0xdb   :  { %v106_v11 = vadd.f32 %v211_v9, %v105_v10  ;;  %v229_v12 = vpop.f32.mrb[1].mxu0 }
  0xdd   :  { %v109_v13 = vmax.f32 %v106_v11, 0.0 }
  0xdf   :  { %235 = vmatmul.mubr.msk.f32.vlgmr.msra.gmra.mrb[0].mxu1 %vm31_vm4, %v109_v13 }
 0x1b2   :  { %v191_v15 = vpop.f32.mrb[0].mxu1 }
 0x1b3   :  { %v192_v16 = vadd.f32 %v214_v14, %v191_v15  ;;  %v236_v17 = vpop.f32.mrb[1].mxu1 }
 0x1b5   :  { %196 = vst.msk [vmem:[#allocation2] sm:$0xff] %vm195_vm5, %v192_v16 }
 0x1b6   :  { %261 = shalt.err (!%p258_p4)
}
 0x1b7   :  { %s262_s8 = scalar_lea.hbm %s347_s5, 128 }
 0x1b8   :  { %p263_p5 = scmp.ne.s32.totalorder %s347_s5, %s262_s8  ;;  %p266_p6 = scmp.lt.u32.totalorder %s262_s8, %s347_s5 }
 0x1ba   :  { %p268_p7 = pnand %p266_p6, %p263_p5 }
 0x1bc   :  { %271 = shalt.err (!%p268_p7)
}
 0x1bd   :  { %206 = dma.vmem_to_hbm [thread:$0]  %s204_s6, 128, %s347_s5, [#allocation3]  }
 0x1be   :  { %272 = dma.done.wait [#allocation3], 128  }
 0x1bf   :  { %273 = vsyncadd [#allocation3], 4294967168 }
 0x1c0   :  { %210 = vsyncpa [#allocation3], 1 }

</bundles_post_ra>
